<compile_context>
chip_gen: v7x
topology: tpu7x:2x2x1
jax: 0.10.0
libtpu: 0.0.40
codegen_flags: <defaults>
</compile_context>

<pallas_src>
import functools

import jax
import jax.numpy as jnp
from jax import lax
from jax.experimental import pallas as pl
from jax.experimental.pallas import tpu as pltpu


def _critic_mlp_kernel(n_hidden, *refs):
    """refs = (x, w0, b0, ..., w_{n_hidden-1}, b_{n_hidden-1}, w_last, b_last, out).

    x      : (TB, D)        batch tile, HBM dtype (f32 or bf16)
    w_i    : (H_out, H_in)  PyTorch layout, f32, VMEM-resident across the grid
    b_i    : (H_out, 1)     f32
    w_last : (H_last, 1)    f32 column
    b_last : (1, 1)         f32
    out    : (1, TB)        lane-dense value slab
    """
    x_ref = refs[0]
    o_ref = refs[-1]
    w_last_ref = refs[-3]
    b_last_ref = refs[-2]

    # Cast under the DMA (no separate wrapper-side HBM pass).  All compute is
    # f32; this tiny MLP is nowhere near MXU/VALU-bound, everything hides
    # under the state DMA.
    x = x_ref[...].astype(jnp.float32)                       # (TB, D)

    # ---- first hidden layer --------------------------------------------------
    # Contract the feature axis of BOTH operands (w0 . x over D) so the batch
    # lands on the lane axis of the activations: (H0, D) . (TB, D) -> (H0, TB).
    # Any layout fixup Mosaic inserts here is XLU work hidden under DMA slack;
    # a wrapper-side transpose of the state would cost a full extra HBM pass.
    w0 = refs[1][...]
    h = lax.dot_general(
        w0, x,
        dimension_numbers=(((1,), (1,)), ((), ())),
        preferred_element_type=jnp.float32)
    h = jnp.maximum(h + refs[2][...], 0.0)

    # ---- remaining hidden layers ----------------------------------------------
    for i in range(1, n_hidden):
        w = refs[1 + 2 * i][...]
        b = refs[2 + 2 * i][...]
        h = jnp.dot(w, h, preferred_element_type=jnp.float32)
        h = jnp.maximum(h + b, 0.0)

    # ---- final Linear(hidden -> 1): VPU multiply + sublane reduce ---------------
    w_last = w_last_ref[...]                                  # (H_last, 1)
    out = jnp.sum(h * w_last, axis=0, keepdims=True)          # (1, TB) lane-dense
    out = out + b_last_ref[...]                               # scalar bias
    o_ref[...] = out.astype(o_ref.dtype)


def _resident_spec(arr, single_buffer):
    """Full-array block, constant index_map -> stays resident in VMEM."""
    nd = arr.ndim
    if single_buffer:
        # Constant index_map means the block is never re-fetched; a single
        # buffer halves the VMEM footprint of wide resident weights.
        return pl.BlockSpec(arr.shape, lambda i, _nd=nd: (0,) * _nd,
                            pipeline_mode=pl.Buffered(1))
    return pl.BlockSpec(arr.shape, lambda i, _nd=nd: (0,) * _nd)


def _round_up(x, m):
    return ((x + m - 1) // m) * m


def _choose_tile(batch, block_batch):
    """Pick the batch tile.

    - batch <= 128: one full-extent block.
    - otherwise: lane-aligned tiles, at least 2 grid steps (so the "parallel"
      axis spans both v7x TensorCores), capped at block_batch.
    """
    if batch <= 128:
        return batch
    tb = min(block_batch, _round_up(-(-batch // 2), 128))
    if tb >= batch:
        return batch
    return tb


def _vmem_estimate_bytes(tb, dims, single_buffer_weights):
    """Padded-VMEM budget: double-buffered state/out tiles, resident params,
    and the largest live activation slab (f32)."""
    def padded(r, c, itemsize=4):
        return _round_up(r, 8) * _round_up(c, 128) * itemsize

    est = 2 * padded(tb, dims[0])            # state tile (double-buffered)
    est += 2 * padded(1, tb)                 # output tile
    wbuf = 1 if single_buffer_weights else 2
    for i in range(len(dims) - 1):
        est += wbuf * padded(dims[i + 1], dims[i])   # weight
        est += wbuf * padded(dims[i + 1], 1)         # bias
    est += 2 * padded(max(dims[1:]), tb)     # largest activation (features, TB)
    return est


@functools.partial(jax.jit, static_argnames=("block_batch",))
def critic_forward(state, params, *, block_batch=8192):
    """Forward pass.

    state:  (batch, state_dims) in its producer's dtype (f32 or bf16).
    params: list of (W, b) in PyTorch nn.Linear layout (W: (out, in), b: (out,)).
    Returns (batch, 1) in state.dtype.
    """
    batch, state_dims = state.shape
    n_layers = len(params)
    n_hidden = n_layers - 1
    # TODO(synk): hidden_dims == [] (a single Linear(state_dims, 1)) is not
    # handled by this fused kernel; PPO configs always use >= 1 hidden layer.
    assert n_hidden >= 1, "need at least one hidden layer"
    assert block_batch % 128 == 0, "block_batch must be lane-aligned (x128)"

    dims = [state_dims] + [w.shape[0] for (w, _) in params]   # [D, H0, ..., 1]
    max_hidden = max(dims[1:])
    single_buffer_weights = max_hidden >= 1024

    tb = _choose_tile(batch, block_batch)

    # --- operand packaging (no state copy / cast in the wrapper) ---------------
    operands = [state]
    for w, b in params[:-1]:
        operands.append(w.astype(jnp.float32))                # (out, in), resident
        operands.append(b.reshape(-1, 1).astype(jnp.float32)) # (out, 1)
    w_last, b_last = params[-1]
    operands.append(w_last.reshape(-1, 1).astype(jnp.float32))  # (H_last, 1)
    operands.append(b_last.reshape(1, 1).astype(jnp.float32))   # (1, 1)

    in_specs = [pl.BlockSpec((tb, state_dims), lambda i: (i, 0))]  # tiled state
    in_specs += [_resident_spec(a, single_buffer_weights) for a in operands[1:]]

    # Explicit VMEM budget: raises v5e's 16 MiB scoped default for large tiles,
    # stays within v7x's 64 MiB physical VMEM.
    est = _vmem_estimate_bytes(tb, dims, single_buffer_weights)
    vmem_limit = max(32 << 20, min(int(1.5 * est), 60 << 20))

    out = pl.pallas_call(
        functools.partial(_critic_mlp_kernel, n_hidden),
        grid=(pl.cdiv(batch, tb),),
        in_specs=in_specs,
        # Lane-dense (1, TB) output slab.  (Sublane-folding / consumer fusion is
        # a possible micro-opt but output traffic is only 4 B/element.)
        out_specs=pl.BlockSpec((1, tb), lambda i: (0, i)),
        out_shape=jax.ShapeDtypeStruct((1, batch), state.dtype),
        compiler_params=pltpu.CompilerParams(
            dimension_semantics=("parallel",),                 # megacore on v7x
            vmem_limit_bytes=vmem_limit),
    )(*operands)

    return out.reshape(batch, 1)   # (1, batch) row slab -> (batch, 1), same order


def init_critic_params(key, state_dims, hidden_dims, dtype=jnp.float32):
    """nn.Linear-style U(-1/sqrt(fan_in), 1/sqrt(fan_in)) init, PyTorch layout."""
    dims = [state_dims] + list(hidden_dims) + [1]
    params = []
    for i in range(len(dims) - 1):
        fan_in, fan_out = dims[i], dims[i + 1]
        key, kw, kb = jax.random.split(key, 3)
        bound = 1.0 / float(fan_in) ** 0.5
        w = jax.random.uniform(kw, (fan_out, fan_in), dtype, -bound, bound)
        b = jax.random.uniform(kb, (fan_out,), dtype, -bound, bound)
        params.append((w, b))
    return params


def critic_forward_ref(state, params):
    """Pure-JAX reference of the same forward pass (PyTorch layout params)."""
    h = state.astype(jnp.float32)
    for i, (w, b) in enumerate(params):
        h = h @ w.astype(jnp.float32).T + b.astype(jnp.float32)
        if i < len(params) - 1:
            h = jnp.maximum(h, 0.0)
    return h


if __name__ == "__main__":
    key = jax.random.PRNGKey(0)
    state_dims = 16
    hidden_dims = [32, 32]

    key, k_params = jax.random.split(key)
    params = init_critic_params(k_params, state_dims, hidden_dims)

    # (batch, block_batch) cases: single full-extent block, exact multi-block
    # tiling (>= 2 grid steps), and a non-divisible batch exercising the masked
    # partial last block.
    for batch, bb in [(64, 8192), (256, 8192), (200, 128)]:
        key, k_state = jax.random.split(key)
        state = jax.random.normal(k_state, (batch, state_dims), jnp.float32)
        ref = critic_forward_ref(state, params)

        value = critic_forward(state, params, block_batch=bb)
        value = jax.block_until_ready(value)
        assert value.shape == (batch, 1), value.shape
        assert jnp.allclose(value, ref, atol=1e-5, rtol=1e-5), (
            batch, bb, float(jnp.max(jnp.abs(value - ref))))

        # bf16 state "materialized upstream": the kernel DMAs bf16 (half the
        # HBM traffic) and casts to f32 under the DMA; weights stay f32.
        value_bf16 = critic_forward(state.astype(jnp.bfloat16), params,
                                    block_batch=bb)
        value_bf16 = jax.block_until_ready(value_bf16)
        assert value_bf16.shape == (batch, 1), value_bf16.shape
        assert jnp.allclose(value_bf16.astype(jnp.float32), ref,
                            atol=5e-2, rtol=5e-2), (
            batch, bb, float(jnp.max(jnp.abs(value_bf16.astype(jnp.float32) - ref))))

    print("KERNEL_OK")
</pallas_src>

<mosaic_0001>
module attributes {stable_mosaic.version = 11 : i64} {
  func.func @_critic_mlp_kernel(%arg0: i32, %arg1: memref<64x16xf32, #tpu.memory_space<vmem>>, %arg2: memref<32x16xf32, #tpu.memory_space<vmem>>, %arg3: memref<32x1xf32, #tpu.memory_space<vmem>>, %arg4: memref<32x32xf32, #tpu.memory_space<vmem>>, %arg5: memref<32x1xf32, #tpu.memory_space<vmem>>, %arg6: memref<32x1xf32, #tpu.memory_space<vmem>>, %arg7: memref<1x1xf32, #tpu.memory_space<vmem>>, %arg8: memref<1x64xf32, #tpu.memory_space<vmem>>) attributes {dimension_semantics = [#tpu.dimension_semantics<parallel>], iteration_bounds = array<i64: 1>, scalar_prefetch = 0 : i64, scratch_operands = 0 : i64, tpu.core_type = #tpu.core_type<tc>, window_params = [{transform_indices = @transform_0, window_bounds = array<i64: 64, 16>}, {pipeline_mode = #tpu.pipeline_mode<synchronous>, transform_indices = @transform_1, window_bounds = array<i64: 32, 16>}, {pipeline_mode = #tpu.pipeline_mode<synchronous>, transform_indices = @transform_2, window_bounds = array<i64: 32, 1>}, {pipeline_mode = #tpu.pipeline_mode<synchronous>, transform_indices = @transform_3, window_bounds = array<i64: 32, 32>}, {pipeline_mode = #tpu.pipeline_mode<synchronous>, transform_indices = @transform_4, window_bounds = array<i64: 32, 1>}, {pipeline_mode = #tpu.pipeline_mode<synchronous>, transform_indices = @transform_5, window_bounds = array<i64: 32, 1>}, {pipeline_mode = #tpu.pipeline_mode<synchronous>, transform_indices = @transform_6, window_bounds = array<i64: 1, 1>}, {transform_indices = @transform_7, window_bounds = array<i64: 1, 64>}]} {
    %c0 = arith.constant 0 : index
    %c0_0 = arith.constant 0 : index
    %0 = vector.load %arg1[%c0, %c0_0] : memref<64x16xf32, #tpu.memory_space<vmem>>, vector<64x16xf32>
    %c0_1 = arith.constant 0 : index
    %c0_2 = arith.constant 0 : index
    %1 = vector.load %arg2[%c0_1, %c0_2] : memref<32x16xf32, #tpu.memory_space<vmem>>, vector<32x16xf32>
    %cst = arith.constant dense<0.000000e+00> : vector<32x64xf32>
    %2 = tpu.matmul %1, %0, %cst {dimension_numbers = #tpu.dot_dimension_numbers<[1], [1], [0], [0], [0, 0, 1, 0], [], []>} : vector<32x16xf32>, vector<64x16xf32>, vector<32x64xf32> -> vector<32x64xf32>
    %c0_3 = arith.constant 0 : index
    %c0_4 = arith.constant 0 : index
    %3 = vector.load %arg3[%c0_3, %c0_4] : memref<32x1xf32, #tpu.memory_space<vmem>>, vector<32x1xf32>
    %4 = vector.broadcast %3 : vector<32x1xf32> to vector<32x64xf32>
    %5 = arith.addf %2, %4 : vector<32x64xf32>
    %cst_5 = arith.constant 0.000000e+00 : f32
    %6 = vector.broadcast %cst_5 : f32 to vector<32x64xf32>
    %7 = arith.maximumf %5, %6 : vector<32x64xf32>
    %c0_6 = arith.constant 0 : index
    %c0_7 = arith.constant 0 : index
    %8 = vector.load %arg4[%c0_6, %c0_7] : memref<32x32xf32, #tpu.memory_space<vmem>>, vector<32x32xf32>
    %c0_8 = arith.constant 0 : index
    %c0_9 = arith.constant 0 : index
    %9 = vector.load %arg5[%c0_8, %c0_9] : memref<32x1xf32, #tpu.memory_space<vmem>>, vector<32x1xf32>
    %cst_10 = arith.constant dense<0.000000e+00> : vector<32x64xf32>
    %10 = tpu.matmul %8, %7, %cst_10 {dimension_numbers = #tpu.dot_dimension_numbers<[1], [0], [0], [1], [0, 0, 1, 1], [], []>} : vector<32x32xf32>, vector<32x64xf32>, vector<32x64xf32> -> vector<32x64xf32>
    %11 = vector.broadcast %9 : vector<32x1xf32> to vector<32x64xf32>
    %12 = arith.addf %10, %11 : vector<32x64xf32>
    %cst_11 = arith.constant 0.000000e+00 : f32
    %13 = vector.broadcast %cst_11 : f32 to vector<32x64xf32>
    %14 = arith.maximumf %12, %13 : vector<32x64xf32>
    %c0_12 = arith.constant 0 : index
    %c0_13 = arith.constant 0 : index
    %15 = vector.load %arg6[%c0_12, %c0_13] : memref<32x1xf32, #tpu.memory_space<vmem>>, vector<32x1xf32>
    %16 = vector.broadcast %15 : vector<32x1xf32> to vector<32x64xf32>
    %17 = arith.mulf %14, %16 : vector<32x64xf32>
    %cst_14 = arith.constant dense<0.000000e+00> : vector<64xf32>
    %18 = vector.multi_reduction <add>, %17, %cst_14 [0] : vector<32x64xf32> to vector<64xf32>
    %19 = vector.shape_cast %18 : vector<64xf32> to vector<1x64xf32>
    %c0_15 = arith.constant 0 : index
    %c0_16 = arith.constant 0 : index
    %20 = vector.load %arg7[%c0_15, %c0_16] : memref<1x1xf32, #tpu.memory_space<vmem>>, vector<1x1xf32>
    %21 = vector.broadcast %20 : vector<1x1xf32> to vector<1x64xf32>
    %22 = arith.addf %19, %21 : vector<1x64xf32>
    %c0_17 = arith.constant 0 : index
    %c0_18 = arith.constant 0 : index
    %23 = vector.load %arg8[%c0_17, %c0_18] : memref<1x64xf32, #tpu.memory_space<vmem>>, vector<1x64xf32>
    tpu.vector_store %arg8[%c0_17, %c0_18], %22 {strides = array<i32>} : memref<1x64xf32, #tpu.memory_space<vmem>>, vector<1x64xf32>,
    return
  }
  func.func @transform_0(%arg0: i32) -> (i32, i32) {
    %c0_i32 = arith.constant 0 : i32
    %c0_i32_0 = arith.constant 0 : i32
    return %arg0, %c0_i32 : i32, i32
  }
  func.func @transform_1(%arg0: i32) -> (i32, i32) {
    %c0_i32 = arith.constant 0 : i32
    %c0_i32_0 = arith.constant 0 : i32
    %c0_i32_1 = arith.constant 0 : i32
    return %c0_i32, %c0_i32_0 : i32, i32
  }
  func.func @transform_2(%arg0: i32) -> (i32, i32) {
    %c0_i32 = arith.constant 0 : i32
    %c0_i32_0 = arith.constant 0 : i32
    %c0_i32_1 = arith.constant 0 : i32
    return %c0_i32, %c0_i32_0 : i32, i32
  }
  func.func @transform_3(%arg0: i32) -> (i32, i32) {
    %c0_i32 = arith.constant 0 : i32
    %c0_i32_0 = arith.constant 0 : i32
    %c0_i32_1 = arith.constant 0 : i32
    return %c0_i32, %c0_i32_0 : i32, i32
  }
  func.func @transform_4(%arg0: i32) -> (i32, i32) {
    %c0_i32 = arith.constant 0 : i32
    %c0_i32_0 = arith.constant 0 : i32
    %c0_i32_1 = arith.constant 0 : i32
    return %c0_i32, %c0_i32_0 : i32, i32
  }
  func.func @transform_5(%arg0: i32) -> (i32, i32) {
    %c0_i32 = arith.constant 0 : i32
    %c0_i32_0 = arith.constant 0 : i32
    %c0_i32_1 = arith.constant 0 : i32
    return %c0_i32, %c0_i32_0 : i32, i32
  }
  func.func @transform_6(%arg0: i32) -> (i32, i32) {
    %c0_i32 = arith.constant 0 : i32
    %c0_i32_0 = arith.constant 0 : i32
    %c0_i32_1 = arith.constant 0 : i32
    return %c0_i32, %c0_i32_0 : i32, i32
  }
  func.func @transform_7(%arg0: i32) -> (i32, i32) {
    %c0_i32 = arith.constant 0 : i32
    %c0_i32_0 = arith.constant 0 : i32
    return %c0_i32, %arg0 : i32, i32
  }
}

</mosaic_0001>

<bundles_post_ra>
// kernel: critic_forward.1
= control target key start
LH: loop header
LB: loop body
LE: loop exit
PB: predicated region body
PF: predicated region fallthrough
CT: control target
= control target key end

     0   :  { %s697_s0 = inlined_call_operand.vmem [shape: f32[64,16], index: 0, kind: input, shape index: {}]   ;;  %s698_s1 = inlined_call_operand.vmem [shape: f32[32,16], index: 1, kind: input, shape index: {}]   ;;  %s699_s2 = inlined_call_operand.vmem [shape: f32[32,1], index: 2, kind: input, shape index: {}]   ;;  %s700_s3 = inlined_call_operand.vmem [shape: f32[32,32], index: 3, kind: input, shape index: {}]   ;;  %s701_s4 = inlined_call_operand.vmem [shape: f32[32,1], index: 4, kind: input, shape index: {}]   ;;  %s702_s5 = inlined_call_operand.vmem [shape: f32[32,1], index: 5, kind: input, shape index: {}]   ;;  %s703_s6 = inlined_call_operand.<no memory space> [shape: f32[1,1], index: 6, kind: input, shape index: {}]   ;;  %s704_s7 = inlined_call_operand.hbm [shape: f32[1,64], index: 7, kind: output, shape index: {}]  }
   0x1   :  { %v12_v0 = vstv %s703_s6 }
   0x2   :  { %13 = vst [vmem:[#allocation2] sm:$0x1] %v12_v0 }
   0x3   :  { %v29_v1 = vld [vmem:[%s697_s0] sm:$0xff]  ;;  %v30_v2 = vld [vmem:[%s697_s0 + $0x8] sm:$0xff]  ;;  %vm65_vm0 = vcmask 130048   ;;  %v31_v3 = vld [vmem:[%s697_s0 + $0x10] sm:$0xff]  ;;  %v522_v7 = vmov 0  }
   0x4   :  { %v462_v4 = vpack.c.bf16 %v30_v2, %v29_v1  ;;  %vm578_vm1 = vmpackc.low %vm65_vm0, %vm65_vm0  ;;  %v32_v6 = vld [vmem:[%s697_s0 + $0x18] sm:$0xff]  ;;  %496 = vset.pattern.permute.xlu0 %v522_v7  ;;  %497 = vset.pattern.permute.xlu1 %v522_v7  ;;  %v37_v9 = vld [vmem:[%s698_s1] sm:$0xff] }
   0x5   :  { %v468_v8 = vpack.c.bf16 %v32_v6, %v31_v3  ;;  %442 = vmatprep.mubr.msk.f32.mxu0 %vm65_vm0, %v37_v9  ;;  %v41_v10 = vld [vmem:[%s699_s2] sm:$0xff]  ;;  %v43_v11 = vld [vmem:[%s699_s2 + $0x10] sm:$0xff]  ;;  %v34_v13 = vld [vmem:[%s697_s0 + $0x28] sm:$0xff] }
   0x6   :  { %464 = vmatprep.subr.msk.bf16.mxu0 %vm578_vm1, %v462_v4  ;;  %47 = vperm.xlu0 %496, %v41_v10   ;;  %v33_v12 = vld [vmem:[%s697_s0 + $0x20] sm:$0xff]  ;;  %v42_v14 = vld [vmem:[%s699_s2 + $0x8] sm:$0xff]  ;;  %v44_v15 = vld [vmem:[%s699_s2 + $0x18] sm:$0xff] }
   0x7   :  { %467 = vmatpush3.bf16.xpose.msk.msra.mxu0 %vm578_vm1, %v462_v4  ;;  %57 = vperm.xlu1 %497, %v43_v11  }
   0x8   :  { %470 = vmatprep.subr.msk.bf16.mxu0 %vm578_vm1, %v468_v8 }
   0x9   :  { %14 = vsyncpa [#allocation4], 0  ;;  %v474_v16 = vpack.c.bf16 %v34_v13, %v33_v12  ;;  %v195_v17 = vld [vmem:[%s701_s4] sm:$0xff]  ;;  %v196_v18 = vld [vmem:[%s701_s4 + $0x8] sm:$0xff]  ;;  %vm219_vm2 = vcmask 261120   ;;  %vm349_vm3 = vcmask 523264  }
   0xa   :  { %52 = vperm.xlu0 %496, %v42_v14   ;;  %v35_v19 = vld [vmem:[%s697_s0 + $0x30] sm:$0xff]  ;;  %v36_v20 = vld [vmem:[%s697_s0 + $0x38] sm:$0xff]  ;;  %v321_v24 = vld [vmem:[%s702_s5] sm:$0xff]  ;;  %vm374_vm4 = vcmask 516096  }
   0xb   :  { %62 = vperm.xlu1 %497, %v44_v15   ;;  %v197_v21 = vld [vmem:[%s701_s4 + $0x10] sm:$0xff]  ;;  %v198_v22 = vld [vmem:[%s701_s4 + $0x18] sm:$0xff]  ;;  %v480_v23 = vpack.c.bf16 %v36_v20, %v35_v19  ;;  %v322_v25 = vld [vmem:[%s702_s5 + $0x8] sm:$0xff]  ;;  %v369_v20 = vlaneseq }
   0xc   :  { %v323_v26 = vld [vmem:[%s702_s5 + $0x10] sm:$0xff]  ;;  %v324_v27 = vld [vmem:[%s702_s5 + $0x18] sm:$0xff]  ;;  %v363_v28 = vld [vmem:[#allocation2] sm:$0x1] }
   0xd   :  { %v38_v29 = vld [vmem:[%s698_s1 + $0x8] sm:$0xff]  ;;  %v39_v30 = vld [vmem:[%s698_s1 + $0x10] sm:$0xff]  ;;  %v40_v31 = vld [vmem:[%s698_s1 + $0x18] sm:$0xff] }
   0xe   :  { %201 = vperm.xlu0 %496, %v195_v17   ;;  %v191_v32 = vld [vmem:[%s700_s3] sm:$0xff]  ;;  %v192_v51 = vld [vmem:[%s700_s3 + $0x8] sm:$0xff]  ;;  %v193_v52 = vld [vmem:[%s700_s3 + $0x10] sm:$0xff] }
   0xf   :  { %473 = vmatpush3.bf16.xpose.msk.msra.mxu0 %vm578_vm1, %v468_v8  ;;  %206 = vperm.xlu1 %497, %v196_v18   ;;  %v194_v53 = vld [vmem:[%s700_s3 + $0x18] sm:$0xff]  ;;  %s523_s3 = smov [#allocation3]  }
  0x10   :  { %476 = vmatprep.subr.msk.bf16.mxu0 %vm578_vm1, %v474_v16  ;;  %456 = vmatprep.mubr.msk.f32.mxu1 %vm219_vm2, %v191_v32  ;;  %s382_s28 = sshll.u32 %s523_s3, 4  ;;  %s383_s28 = int_to_ptr.vmem [resolvable:$true] %s382_s28 }
  0x11   :  { %s498_s29 = scalar_lea.vmem %s383_s28, 16  ;;  %s502_s30 = scalar_lea.vmem %s383_s28, 32 }
  0x12   :  { %211 = vperm.xlu0 %496, %v197_v21   ;;  %p499_p0 = scmp.ne.s32.totalorder %s383_s28, %s498_s29  ;;  %p503_p1 = scmp.lt.s32.totalorder %s383_s28, %s383_s28 }
  0x13   :  { %216 = vperm.xlu1 %497, %v198_v22   ;;  %p504_p2 = scmp.lt.s32.totalorder %s502_s30, %s498_s29 }
  0x15   :  { %p505_p3 = por %p504_p2, %p503_p1 }
  0x16   :  { %327 = vperm.xlu0 %496, %v321_v24  }
  0x17   :  { %479 = vmatpush3.bf16.xpose.msk.msra.mxu0 %vm578_vm1, %v474_v16  ;;  %332 = vperm.xlu1 %497, %v322_v25   ;;  %p506_p4 = pnand %p505_p3, %p499_p0 }
  0x18   :  { %482 = vmatprep.subr.msk.bf16.mxu0 %vm578_vm1, %v480_v23 }
  0x1a   :  { %337 = vperm.xlu0 %496, %v323_v26  }
  0x1b   :  { %342 = vperm.xlu1 %497, %v324_v27  }
  0x1e   :  { %366 = vperm.xlu0 %496, %v363_v28  }
  0x1f   :  { %485 = vmatpush3.bf16.xpose.msk.msra.mxu0 %vm578_vm1, %v480_v23  ;;  %v370_v23 = vshrl.u32 %v369_v20, 7 }
  0x21   :  { %v371_v26 = vsub.s32 0, %v370_v23 }
  0x26   :  { %443 = vmatmul.mubr.msk.f32.vlgmr.msra.gmra.mrb[0].mxu0 %vm65_vm0, %v38_v29 }
  0x27   :  { %445 = vmatprep.mubr.msk.f32.mxu0 %vm65_vm0, %v39_v30 }
  0x2a   :  { %446 = vmatmul.mubr.msk.f32.gmra.mrb[2].mxu0 %vm65_vm0, %v40_v31 }
  0x85   :  { %v48_v33 = vpop.permute.xlu0 %47 }
  0x86   :  { %v58_v34 = vpop.permute.xlu1 %57 }
  0x89   :  { %v53_v35 = vpop.permute.xlu0 %52 }
  0x8a   :  { %v63_v41 = vpop.permute.xlu1 %62 }
  0x8d   :  { %v202_v54 = vpop.permute.xlu0 %201 }
  0x8e   :  { %v207_v55 = vpop.permute.xlu1 %206 }
  0x91   :  { %v212_v56 = vpop.permute.xlu0 %211 }
  0x92   :  { %v217_v57 = vpop.permute.xlu1 %216 }
  0x95   :  { %v328_v62 = vpop.permute.xlu0 %327 }
  0x96   :  { %v333_v63 = vpop.permute.xlu1 %332 }
  0x99   :  { %v338_v12 = vpop.permute.xlu0 %337 }
  0x9a   :  { %v343_v13 = vpop.permute.xlu1 %342 }
  0x9d   :  { %v367_v28 = vpop.permute.xlu0 %366 }
  0x9e   :  { %v372_v30 = vrot.slane %v367_v28, %v371_v26 }
  0xf9   :  { %v444_v36 = vpop.f32.mrb[0].mxu0 }
  0xfa   :  { %v174_v37 = vadd.f32 %v444_v36, %v53_v35  ;;  %v168_v38 = vpop.f32.mrb[1].mxu0 }
  0xfb   :  { %v169_v39 = vadd.f32 %v168_v38, %v48_v33 }
  0xfc   :  { %v188_v40 = vmax.f32 %v174_v37, 0.0 }
  0xfd   :  { %v187_v42 = vmax.f32 %v169_v39, 0.0  ;;  %v447_v43 = vpop.f32.mrb[2].mxu0 }
  0xfe   :  { %v184_v44 = vadd.f32 %v447_v43, %v63_v41  ;;  %v178_v45 = vpop.f32.mrb[3].mxu0 }
  0xff   :  { %v179_v46 = vadd.f32 %v178_v45, %v58_v34  ;;  %v486_v47 = vpack.c.bf16 %v188_v40, %v187_v42 }
 0x100   :  { %v190_v48 = vmax.f32 %v184_v44, 0.0 }
 0x101   :  { %v189_v49 = vmax.f32 %v179_v46, 0.0  ;;  %487 = vmatprep.subr.bf16.mxu1 %v486_v47 }
 0x102   :  { %489 = vmatpush3.bf16.msra.mxu1 %v486_v47 }
 0x103   :  { %v490_v50 = vpack.c.bf16 %v190_v48, %v189_v49 }
 0x105   :  { %491 = vmatprep.subr.bf16.mxu1 %v490_v50 }
 0x106   :  { %493 = vmatpush3.bf16.msra.mxu1 %v490_v50 }
 0x109   :  { %457 = vmatmul.mubr.msk.f32.vlgmr.msra.gmra.mrb[0].mxu1 %vm219_vm2, %v192_v51 }
 0x10a   :  { %459 = vmatprep.mubr.msk.f32.mxu1 %vm219_vm2, %v193_v52 }
 0x10d   :  { %460 = vmatmul.mubr.msk.f32.gmra.mrb[2].mxu1 %vm219_vm2, %v194_v53 }
 0x1dc   :  { %v458_v58 = vpop.f32.mrb[0].mxu1 }
 0x1dd   :  { %v304_v59 = vadd.f32 %v458_v58, %v207_v55  ;;  %v298_v60 = vpop.f32.mrb[1].mxu1 }
 0x1de   :  { %v299_v61 = vadd.f32 %v298_v60, %v202_v54 }
 0x1df   :  { %v318_v0 = vmax.f32 %v304_v59, 0.0 }
 0x1e0   :  { %v317_v1 = vmax.f32 %v299_v61, 0.0  ;;  %v461_v2 = vpop.f32.mrb[2].mxu1 }
 0x1e1   :  { %v346_v3 = vmul.f32 %v333_v63, %v318_v0  ;;  %v314_v4 = vadd.f32 %v461_v2, %v217_v57  ;;  %v308_v5 = vpop.f32.mrb[3].mxu1 }
 0x1e2   :  { %v345_v6 = vmul.f32 %v328_v62, %v317_v1  ;;  %v309_v7 = vadd.f32 %v308_v5, %v212_v56 }
 0x1e3   :  { %v351_v8 = vsel %vm349_vm3, %v346_v3, 0.0  ;;  %v320_v9 = vmax.f32 %v314_v4, 0.0 }
 0x1e4   :  { %v350_v10 = vsel %vm349_vm3, %v345_v6, 0.0  ;;  %v319_v11 = vmax.f32 %v309_v7, 0.0 }
 0x1e5   :  { %v352_v14 = vadd.f32 %v351_v8, %v350_v10  ;;  %v348_v15 = vmul.f32 %v343_v13, %v320_v9 }
 0x1e6   :  { %v347_v16 = vmul.f32 %v338_v12, %v319_v11 }
 0x1e7   :  { %v355_v19 = vsel %vm349_vm3, %v348_v15, 0.0 }
 0x1e8   :  { %v353_v17 = vsel %vm349_vm3, %v347_v16, 0.0 }
 0x1e9   :  { %v354_v18 = vadd.f32 %v353_v17, %v352_v14 }
 0x1eb   :  { %v356_v21 = vadd.f32 %v355_v19, %v354_v18 }
 0x1ed   :  { %v357_v22 = vrot.slane %v356_v21, 4 }
 0x1ef   :  { %v358_v24 = vadd.f32 %v357_v22, %v356_v21 }
 0x1f1   :  { %v359_v25 = vrot.slane %v358_v24, 2 }
 0x1f3   :  { %v360_v27 = vadd.f32 %v359_v25, %v358_v24 }
 0x1f5   :  { %v361_v29 = vrot.slane %v360_v27, 1 }
 0x1f7   :  { %v362_v31 = vadd.f32 %v361_v29, %v360_v27 }
 0x1f9   :  { %v373_v32 = vadd.f32 %v372_v30, %v362_v31 }
 0x1fb   :  { %375 = vst.msk [vmem:[#allocation3] sm:$0x1] %vm374_vm4, %v373_v32 }
 0x1fc   :  { %509 = shalt.err (!%p506_p4)
}
 0x1fd   :  { %s510_s9 = scalar_lea.hbm %s704_s7, 16 }
 0x1fe   :  { %p511_p5 = scmp.ne.s32.totalorder %s704_s7, %s510_s9  ;;  %p514_p6 = scmp.lt.u32.totalorder %s510_s9, %s704_s7 }
 0x200   :  { %p516_p7 = pnand %p514_p6, %p511_p5 }
 0x202   :  { %519 = shalt.err (!%p516_p7)
}
 0x203   :  { %385 = dma.vmem_to_hbm [thread:$0]  %s383_s28, 16, %s704_s7, [#allocation4]  }
 0x204   :  { %520 = dma.done.wait [#allocation4], 16  }
 0x205   :  { %521 = vsyncadd [#allocation4], 4294967280 }
 0x206   :  { %389 = vsyncpa [#allocation4], 1 }

</bundles_post_ra>
